<compile_context>
chip_gen: v7x
topology: tpu7x:2x2x1
jax: 0.10.0
libtpu: 0.0.40
codegen_flags: <defaults>
</compile_context>

<pallas_src>
import jax
import jax.numpy as jnp
from jax.experimental import pallas as pl
from jax.experimental.pallas import tpu as pltpu


# --------------------------------- kernel ------------------------------------
def write_unit_kernel(mem_ref, ctrl_ref, ret_ref,
                      wc_ref, bc_ref, wcat_ref, bcat_ref,
                      out_ref):
    T = mem_ref.shape[0]                       # mem_ref: (T, block_b, D)

    # selfControl with wa pre-folded:  sc = ctrl_T @ (wc * wa) + bc * wa
    sc = (jnp.dot(ctrl_ref[T].astype(jnp.bfloat16), wc_ref[...],
                  preferred_element_type=jnp.float32)
          + bc_ref[...])                       # (block_b, D) f32

    # Attention logits, one (block_b, 1) column per step; never materialize a
    # (block_b, T, D) broadcast.  Attn bias is a softmax no-op (and zero-init).
    logits = [jnp.sum(sc * ctrl_ref[t].astype(jnp.float32),
                      axis=-1, keepdims=True) for t in range(T)]

    m = logits[0]
    for t in range(1, T):
        m = jnp.maximum(m, logits[t])
    exps = [jnp.exp(l - m) for l in logits]
    denom = exps[0]
    for t in range(1, T):
        denom = denom + exps[t]
    inv = 1.0 / denom                          # exact recip on a (bb,1) column

    # attn_mem = sum_t softmax_t * memories_t  -- unrolled FMA over small T
    prev_mem = mem_ref[T - 1]                  # native dtype for the MXU below
    attn_mem = (exps[0] * inv) * mem_ref[0].astype(jnp.float32)
    for t in range(1, T):
        attn_mem = attn_mem + (exps[t] * inv) * mem_ref[t].astype(jnp.float32)

    ret16 = ret_ref[...].astype(jnp.bfloat16)
    prev16 = prev_mem.astype(jnp.bfloat16)
    attn16 = attn_mem.astype(jnp.bfloat16)

    # concat = Linear(3D -> D)([retrieved, prev_mem, attn_mem])
    if len(wcat_ref.shape) == 2:
        # lane-aligned concat -> single K=3D MXU matmul (v5e/v6e path)
        concat = jnp.concatenate([ret16, prev16, attn16], axis=-1)
        out = jnp.dot(concat, wcat_ref[...], preferred_element_type=jnp.float32)
    else:
        # wcat passed as (3, D, D): three accumulating dots, no lane-concat
        # copies (preferred on v7x's MRB; required when D % 128 != 0).
        out = (jnp.dot(ret16, wcat_ref[0], preferred_element_type=jnp.float32)
               + jnp.dot(prev16, wcat_ref[1], preferred_element_type=jnp.float32)
               + jnp.dot(attn16, wcat_ref[2], preferred_element_type=jnp.float32))

    out_ref[...] = (out + bcat_ref[...]).astype(out_ref.dtype)


# --------------------------------- wrapper -----------------------------------
def _pick_block_b(B, T, D, act_bytes, out_bytes, act_budget_bytes):
    """Largest batch block that fits the (double-buffered) activation budget."""
    per_row = 2 * ((2 * T + 2) * D * act_bytes + D * out_bytes)
    cap = max(8, int(act_budget_bytes // max(per_row, 1)))
    # Prefer >= 2 grid steps so ("parallel",) can shard across both v7x TCs.
    target = B if B < 16 else max(8, B // 2)
    bb = max(1, min(target, cap, 1024))
    while bb > 1 and B % bb != 0:
        bb -= 1
    return bb


def write_unit_pallas(mems, retrieved, ctrls, params, *, block_b=None,
                      out_dtype=None, vmem_budget_bytes=24 << 20):
    """mems: (T, B, D); ctrls: (T+1, B, D); retrieved: (B, D).

    params = (wc_folded_bf16, bc_folded_f32, wcat_bf16 [(3D,D) or (3,D,D)],
              bcat_f32) from prepare_kernel_params (casts/folds done ONCE there,
    not per call).
    """
    T, B, D = mems.shape
    assert ctrls.shape == (T + 1, B, D)
    wc, bc, wcat, bcat = params

    if out_dtype is None:
        out_dtype = mems.dtype                 # bf16 output halves the writeback
    act_bytes = jnp.dtype(mems.dtype).itemsize
    out_bytes = jnp.dtype(out_dtype).itemsize

    # Resident weights are still double-buffered by the pipeline (block index
    # never changes); account for both copies in the budget.
    weight_bytes = (2 * (wc.size * jnp.dtype(wc.dtype).itemsize
                         + wcat.size * jnp.dtype(wcat.dtype).itemsize)
                    + 2 * (bc.size + bcat.size) * 4)

    if block_b is None:
        block_b = _pick_block_b(B, T, D, act_bytes, out_bytes,
                                vmem_budget_bytes - weight_bytes)
    assert B % block_b == 0, "batch must be divisible by the batch block"
    grid = (B // block_b,)

    block_bytes = (2 * ((2 * T + 2) * block_b * D * act_bytes
                        + block_b * D * out_bytes) + weight_bytes)
    # 32 MiB (the default scoped limit, safe on v7x's 64 MiB) unless the caller
    # raised the budget (e.g. on v6e with 128 MiB physical VMEM).
    vmem_limit = int(min(max(block_bytes + (8 << 20), 32 << 20), 100 << 20))

    def wspec(shape):                          # full-array weight block, resident
        return pl.BlockSpec(shape, lambda i, _n=len(shape): (0,) * _n)

    return pl.pallas_call(
        write_unit_kernel,
        out_shape=jax.ShapeDtypeStruct((B, D), out_dtype),
        grid_spec=pltpu.PrefetchScalarGridSpec(
            num_scalar_prefetch=0,
            grid=grid,
            in_specs=[
                pl.BlockSpec((T, block_b, D), lambda i: (0, i, 0)),      # mems
                pl.BlockSpec((T + 1, block_b, D), lambda i: (0, i, 0)),  # ctrls
                pl.BlockSpec((block_b, D), lambda i: (i, 0)),            # retrieved
                wspec(wc.shape),                                          # wc*wa (bf16)
                wspec(bc.shape),                                          # bc*wa
                wspec(wcat.shape),                                        # wcat (bf16)
                wspec(bcat.shape),                                        # bcat
            ],
            out_specs=pl.BlockSpec((block_b, D), lambda i: (i, 0)),
        ),
        compiler_params=pltpu.CompilerParams(
            dimension_semantics=("parallel",),   # batch axis -> both TCs on v7x
            vmem_limit_bytes=vmem_limit),
    )(mems, ctrls, retrieved, wc, bc, wcat, bcat)


# ------------------- parameter init (xavier_uniform + zero bias) -------------
def xavier_uniform(key, out_dim, in_dim):
    bound = (6.0 / (in_dim + out_dim)) ** 0.5
    # PyTorch layout (out, in); return the transpose (in, out) for x @ W.
    w = jax.random.uniform(key, (out_dim, in_dim), jnp.float32, -bound, bound)
    return w.T


def init_params(key, dim):
    """PyTorch-equivalent f32 parameters (used by the pure-JAX reference)."""
    k1, k2, k3 = jax.random.split(key, 3)
    wc = xavier_uniform(k1, dim, dim)              # control: D -> D, (D, D)
    bc = jnp.zeros((1, dim), jnp.float32)
    wa = xavier_uniform(k2, 1, dim).T              # attn: D -> 1, kept as (1, D)
    # attn bias omitted: zero-init in PyTorch and a softmax no-op regardless.
    wcat = xavier_uniform(k3, dim, 3 * dim)        # concat: 3D -> D, (3D, D)
    bcat = jnp.zeros((1, dim), jnp.float32)
    return wc, bc, wa, wcat, bcat


def prepare_kernel_params(params, *, split_concat=None):
    """One-time fold/cast (hoisted out of the per-step call path).

    Folds wa into the control linear (exact: self_ctrl only feeds sc*wa) and
    casts the MXU weights to bf16.  split_concat=True packs wcat as (3, D, D)
    for the 3-dot accumulate path (recommended on v7x; required if D%128 != 0).
    """
    wc, bc, wa, wcat, bcat = params
    D = wc.shape[0]
    if split_concat is None:
        split_concat = (D % 128 != 0)
    wc_f = (wc * wa).astype(jnp.bfloat16)          # wa scales output columns
    bc_f = bc * wa
    wcat_b = wcat.astype(jnp.bfloat16)
    if split_concat:
        wcat_b = wcat_b.reshape(3, D, D)
    return wc_f, bc_f, wcat_b, bcat


# ---------------- pure-JAX f32 reference mirroring the PyTorch forward -------
def write_unit_ref(memories, retrieved, controls, params):
    wc, bc, wa, wcat, bcat = params
    self_ctrl = controls[-1] @ wc + bc             # (B, D)
    ctrls_cat = jnp.stack(controls[:-1], axis=2)   # (B, D, T)
    attn = self_ctrl[:, :, None] * ctrls_cat       # (B, D, T)
    attn = jnp.einsum('bdt,d->bt', attn, wa[0])    # (B, T)   (attn bias == 0)
    attn = jax.nn.softmax(attn, axis=1)[:, None, :]            # (B, 1, T)
    mems_cat = jnp.stack(memories, axis=2)         # (B, D, T)
    attn_mem = jnp.sum(attn * mems_cat, axis=2)    # (B, D)
    prev_mem = memories[-1]
    concat = jnp.concatenate([retrieved, prev_mem, attn_mem], axis=1)
    return concat @ wcat + bcat


if __name__ == "__main__":
    # D=128 keeps every tile lane-dense; T=4 reasoning steps; B=32 gives a
    # 2-step batch grid (block_b=16 fills the bf16 16-row sublane tile).
    B, D, T = 32, 128, 4

    key = jax.random.PRNGKey(0)
    kp, kd = jax.random.split(key)
    ref_params = init_params(kp, D)
    kernel_params = prepare_kernel_params(ref_params)   # fold + bf16 cast, once

    dkeys = jax.random.split(kd, 2 * T + 2)
    memories = [jax.random.normal(dkeys[i], (B, D), jnp.float32) for i in range(T)]
    controls = [jax.random.normal(dkeys[T + i], (B, D), jnp.float32)
                for i in range(T + 1)]
    retrieved = jax.random.normal(dkeys[-1], (B, D), jnp.float32)

    # A real MAC loop keeps these step-leading bf16 buffers resident across
    # reasoning steps; quantize + stack once here to model that.
    memories_q = [m.astype(jnp.bfloat16) for m in memories]
    controls_q = [c.astype(jnp.bfloat16) for c in controls]
    retrieved_q = retrieved.astype(jnp.bfloat16)
    mems = jnp.stack(memories_q, axis=0)           # (T, B, D)  bf16
    ctrls = jnp.stack(controls_q, axis=0)          # (T+1, B, D) bf16

    out = write_unit_pallas(mems, retrieved_q, ctrls, kernel_params)
    out = jax.block_until_ready(out)

    # Reference sees the same bf16-quantized activations (upcast to f32) and
    # the original f32 parameters.
    ref = write_unit_ref([m.astype(jnp.float32) for m in memories_q],
                         retrieved_q.astype(jnp.float32),
                         [c.astype(jnp.float32) for c in controls_q],
                         ref_params)

    assert out.shape == (B, D)
    out32 = out.astype(jnp.float32)
    max_err = float(jnp.max(jnp.abs(out32 - ref)))
    # tolerance for bf16 MXU operands + bf16 output
    assert jnp.allclose(out32, ref, rtol=2e-2, atol=2e-2), max_err

    print("KERNEL_OK")
</pallas_src>

<mosaic_0001>
module attributes {stable_mosaic.version = 11 : i64} {
  func.func @write_unit_kernel(%arg0: i32, %arg1: memref<4x16x128xbf16, #tpu.memory_space<vmem>>, %arg2: memref<5x16x128xbf16, #tpu.memory_space<vmem>>, %arg3: memref<16x128xbf16, #tpu.memory_space<vmem>>, %arg4: memref<128x128xbf16, #tpu.memory_space<vmem>>, %arg5: memref<1x128xf32, #tpu.memory_space<vmem>>, %arg6: memref<384x128xbf16, #tpu.memory_space<vmem>>, %arg7: memref<1x128xf32, #tpu.memory_space<vmem>>, %arg8: memref<16x128xbf16, #tpu.memory_space<vmem>>) attributes {dimension_semantics = [#tpu.dimension_semantics<parallel>], iteration_bounds = array<i64: 2>, scalar_prefetch = 0 : i64, scratch_operands = 0 : i64, tpu.core_type = #tpu.core_type<tc>, window_params = [{transform_indices = @transform_0, window_bounds = array<i64: 4, 16, 128>}, {transform_indices = @transform_1, window_bounds = array<i64: 5, 16, 128>}, {transform_indices = @transform_2, window_bounds = array<i64: 16, 128>}, {pipeline_mode = #tpu.pipeline_mode<synchronous>, transform_indices = @transform_3, window_bounds = array<i64: 128, 128>}, {pipeline_mode = #tpu.pipeline_mode<synchronous>, transform_indices = @transform_4, window_bounds = array<i64: 1, 128>}, {pipeline_mode = #tpu.pipeline_mode<synchronous>, transform_indices = @transform_5, window_bounds = array<i64: 384, 128>}, {pipeline_mode = #tpu.pipeline_mode<synchronous>, transform_indices = @transform_6, window_bounds = array<i64: 1, 128>}, {transform_indices = @transform_7, window_bounds = array<i64: 16, 128>}]} {
    %c4 = arith.constant 4 : index
    %c0 = arith.constant 0 : index
    %c0_0 = arith.constant 0 : index
    %0 = vector.load %arg2[%c4, %c0, %c0_0] : memref<5x16x128xbf16, #tpu.memory_space<vmem>>, vector<1x16x128xbf16>
    %1 = vector.shape_cast %0 : vector<1x16x128xbf16> to vector<16x128xbf16>
    %c0_1 = arith.constant 0 : index
    %c0_2 = arith.constant 0 : index
    %2 = vector.load %arg4[%c0_1, %c0_2] : memref<128x128xbf16, #tpu.memory_space<vmem>>, vector<128x128xbf16>
    %cst = arith.constant dense<0.000000e+00> : vector<16x128xf32>
    %3 = tpu.matmul %1, %2, %cst {dimension_numbers = #tpu.dot_dimension_numbers<[1], [0], [0], [1], [0, 0, 1, 1], [], []>} : vector<16x128xbf16>, vector<128x128xbf16>, vector<16x128xf32> -> vector<16x128xf32>
    %c0_3 = arith.constant 0 : index
    %c0_4 = arith.constant 0 : index
    %4 = vector.load %arg5[%c0_3, %c0_4] : memref<1x128xf32, #tpu.memory_space<vmem>>, vector<1x128xf32>
    %5 = vector.broadcast %4 : vector<1x128xf32> to vector<16x128xf32>
    %6 = arith.addf %3, %5 : vector<16x128xf32>
    %c0_5 = arith.constant 0 : index
    %c0_6 = arith.constant 0 : index
    %c0_7 = arith.constant 0 : index
    %7 = vector.load %arg2[%c0_5, %c0_6, %c0_7] : memref<5x16x128xbf16, #tpu.memory_space<vmem>>, vector<1x16x128xbf16>
    %8 = vector.shape_cast %7 : vector<1x16x128xbf16> to vector<16x128xbf16>
    %9 = arith.extf %8 : vector<16x128xbf16> to vector<16x128xf32>
    %10 = arith.mulf %6, %9 : vector<16x128xf32>
    %cst_8 = arith.constant dense<0.000000e+00> : vector<16xf32>
    %11 = vector.multi_reduction <add>, %10, %cst_8 [1] : vector<16x128xf32> to vector<16xf32>
    %12 = vector.shape_cast %11 : vector<16xf32> to vector<16x1xf32>
    %c1 = arith.constant 1 : index
    %c0_9 = arith.constant 0 : index
    %c0_10 = arith.constant 0 : index
    %13 = vector.load %arg2[%c1, %c0_9, %c0_10] : memref<5x16x128xbf16, #tpu.memory_space<vmem>>, vector<1x16x128xbf16>
    %14 = vector.shape_cast %13 : vector<1x16x128xbf16> to vector<16x128xbf16>
    %15 = arith.extf %14 : vector<16x128xbf16> to vector<16x128xf32>
    %16 = arith.mulf %6, %15 : vector<16x128xf32>
    %cst_11 = arith.constant dense<0.000000e+00> : vector<16xf32>
    %17 = vector.multi_reduction <add>, %16, %cst_11 [1] : vector<16x128xf32> to vector<16xf32>
    %18 = vector.shape_cast %17 : vector<16xf32> to vector<16x1xf32>
    %c2 = arith.constant 2 : index
    %c0_12 = arith.constant 0 : index
    %c0_13 = arith.constant 0 : index
    %19 = vector.load %arg2[%c2, %c0_12, %c0_13] : memref<5x16x128xbf16, #tpu.memory_space<vmem>>, vector<1x16x128xbf16>
    %20 = vector.shape_cast %19 : vector<1x16x128xbf16> to vector<16x128xbf16>
    %21 = arith.extf %20 : vector<16x128xbf16> to vector<16x128xf32>
    %22 = arith.mulf %6, %21 : vector<16x128xf32>
    %cst_14 = arith.constant dense<0.000000e+00> : vector<16xf32>
    %23 = vector.multi_reduction <add>, %22, %cst_14 [1] : vector<16x128xf32> to vector<16xf32>
    %24 = vector.shape_cast %23 : vector<16xf32> to vector<16x1xf32>
    %c3 = arith.constant 3 : index
    %c0_15 = arith.constant 0 : index
    %c0_16 = arith.constant 0 : index
    %25 = vector.load %arg2[%c3, %c0_15, %c0_16] : memref<5x16x128xbf16, #tpu.memory_space<vmem>>, vector<1x16x128xbf16>
    %26 = vector.shape_cast %25 : vector<1x16x128xbf16> to vector<16x128xbf16>
    %27 = arith.extf %26 : vector<16x128xbf16> to vector<16x128xf32>
    %28 = arith.mulf %6, %27 : vector<16x128xf32>
    %cst_17 = arith.constant dense<0.000000e+00> : vector<16xf32>
    %29 = vector.multi_reduction <add>, %28, %cst_17 [1] : vector<16x128xf32> to vector<16xf32>
    %30 = vector.shape_cast %29 : vector<16xf32> to vector<16x1xf32>
    %31 = arith.maximumf %12, %18 : vector<16x1xf32>
    %32 = arith.maximumf %31, %24 : vector<16x1xf32>
    %33 = arith.maximumf %32, %30 : vector<16x1xf32>
    %34 = arith.subf %12, %33 : vector<16x1xf32>
    %35 = math.exp %34 : vector<16x1xf32>
    %36 = arith.subf %18, %33 : vector<16x1xf32>
    %37 = math.exp %36 : vector<16x1xf32>
    %38 = arith.subf %24, %33 : vector<16x1xf32>
    %39 = math.exp %38 : vector<16x1xf32>
    %40 = arith.subf %30, %33 : vector<16x1xf32>
    %41 = math.exp %40 : vector<16x1xf32>
    %42 = arith.addf %35, %37 : vector<16x1xf32>
    %43 = arith.addf %42, %39 : vector<16x1xf32>
    %44 = arith.addf %43, %41 : vector<16x1xf32>
    %cst_18 = arith.constant 1.000000e+00 : f32
    %45 = vector.broadcast %cst_18 : f32 to vector<16x1xf32>
    %46 = arith.divf %45, %44 : vector<16x1xf32>
    %c3_19 = arith.constant 3 : index
    %c0_20 = arith.constant 0 : index
    %c0_21 = arith.constant 0 : index
    %47 = vector.load %arg1[%c3_19, %c0_20, %c0_21] : memref<4x16x128xbf16, #tpu.memory_space<vmem>>, vector<1x16x128xbf16>
    %48 = vector.shape_cast %47 : vector<1x16x128xbf16> to vector<16x128xbf16>
    %49 = arith.mulf %35, %46 : vector<16x1xf32>
    %c0_22 = arith.constant 0 : index
    %c0_23 = arith.constant 0 : index
    %c0_24 = arith.constant 0 : index
    %50 = vector.load %arg1[%c0_22, %c0_23, %c0_24] : memref<4x16x128xbf16, #tpu.memory_space<vmem>>, vector<1x16x128xbf16>
    %51 = vector.shape_cast %50 : vector<1x16x128xbf16> to vector<16x128xbf16>
    %52 = arith.extf %51 : vector<16x128xbf16> to vector<16x128xf32>
    %53 = vector.broadcast %49 : vector<16x1xf32> to vector<16x128xf32>
    %54 = arith.mulf %53, %52 : vector<16x128xf32>
    %55 = arith.mulf %37, %46 : vector<16x1xf32>
    %c1_25 = arith.constant 1 : index
    %c0_26 = arith.constant 0 : index
    %c0_27 = arith.constant 0 : index
    %56 = vector.load %arg1[%c1_25, %c0_26, %c0_27] : memref<4x16x128xbf16, #tpu.memory_space<vmem>>, vector<1x16x128xbf16>
    %57 = vector.shape_cast %56 : vector<1x16x128xbf16> to vector<16x128xbf16>
    %58 = arith.extf %57 : vector<16x128xbf16> to vector<16x128xf32>
    %59 = vector.broadcast %55 : vector<16x1xf32> to vector<16x128xf32>
    %60 = arith.mulf %59, %58 : vector<16x128xf32>
    %61 = arith.addf %54, %60 : vector<16x128xf32>
    %62 = arith.mulf %39, %46 : vector<16x1xf32>
    %c2_28 = arith.constant 2 : index
    %c0_29 = arith.constant 0 : index
    %c0_30 = arith.constant 0 : index
    %63 = vector.load %arg1[%c2_28, %c0_29, %c0_30] : memref<4x16x128xbf16, #tpu.memory_space<vmem>>, vector<1x16x128xbf16>
    %64 = vector.shape_cast %63 : vector<1x16x128xbf16> to vector<16x128xbf16>
    %65 = arith.extf %64 : vector<16x128xbf16> to vector<16x128xf32>
    %66 = vector.broadcast %62 : vector<16x1xf32> to vector<16x128xf32>
    %67 = arith.mulf %66, %65 : vector<16x128xf32>
    %68 = arith.addf %61, %67 : vector<16x128xf32>
    %69 = arith.mulf %41, %46 : vector<16x1xf32>
    %c3_31 = arith.constant 3 : index
    %c0_32 = arith.constant 0 : index
    %c0_33 = arith.constant 0 : index
    %70 = vector.load %arg1[%c3_31, %c0_32, %c0_33] : memref<4x16x128xbf16, #tpu.memory_space<vmem>>, vector<1x16x128xbf16>
    %71 = vector.shape_cast %70 : vector<1x16x128xbf16> to vector<16x128xbf16>
    %72 = arith.extf %71 : vector<16x128xbf16> to vector<16x128xf32>
    %73 = vector.broadcast %69 : vector<16x1xf32> to vector<16x128xf32>
    %74 = arith.mulf %73, %72 : vector<16x128xf32>
    %75 = arith.addf %68, %74 : vector<16x128xf32>
    %c0_34 = arith.constant 0 : index
    %c0_35 = arith.constant 0 : index
    %76 = vector.load %arg3[%c0_34, %c0_35] : memref<16x128xbf16, #tpu.memory_space<vmem>>, vector<16x128xbf16>
    %77 = arith.truncf %75 : vector<16x128xf32> to vector<16x128xbf16>
    %78 = tpu.concatenate %76, %48, %77 in 1 : vector<16x128xbf16>, vector<16x128xbf16>, vector<16x128xbf16> -> vector<16x384xbf16>
    %c0_36 = arith.constant 0 : index
    %c0_37 = arith.constant 0 : index
    %79 = vector.load %arg6[%c0_36, %c0_37] : memref<384x128xbf16, #tpu.memory_space<vmem>>, vector<384x128xbf16>
    %cst_38 = arith.constant dense<0.000000e+00> : vector<16x128xf32>
    %80 = tpu.matmul %78, %79, %cst_38 {dimension_numbers = #tpu.dot_dimension_numbers<[1], [0], [0], [1], [0, 0, 1, 1], [], []>} : vector<16x384xbf16>, vector<384x128xbf16>, vector<16x128xf32> -> vector<16x128xf32>
    %c0_39 = arith.constant 0 : index
    %c0_40 = arith.constant 0 : index
    %81 = vector.load %arg7[%c0_39, %c0_40] : memref<1x128xf32, #tpu.memory_space<vmem>>, vector<1x128xf32>
    %82 = vector.broadcast %81 : vector<1x128xf32> to vector<16x128xf32>
    %83 = arith.addf %80, %82 : vector<16x128xf32>
    %84 = arith.truncf %83 : vector<16x128xf32> to vector<16x128xbf16>
    %c0_41 = arith.constant 0 : index
    %c0_42 = arith.constant 0 : index
    %85 = vector.load %arg8[%c0_41, %c0_42] : memref<16x128xbf16, #tpu.memory_space<vmem>>, vector<16x128xbf16>
    tpu.vector_store %arg8[%c0_41, %c0_42], %84 {strides = array<i32>} : memref<16x128xbf16, #tpu.memory_space<vmem>>, vector<16x128xbf16>,
    return
  }
  func.func @transform_0(%arg0: i32) -> (i32, i32, i32) {
    %c0_i32 = arith.constant 0 : i32
    %c0_i32_0 = arith.constant 0 : i32
    %c0_i32_1 = arith.constant 0 : i32
    return %c0_i32, %arg0, %c0_i32_0 : i32, i32, i32
  }
  func.func @transform_1(%arg0: i32) -> (i32, i32, i32) {
    %c0_i32 = arith.constant 0 : i32
    %c0_i32_0 = arith.constant 0 : i32
    %c0_i32_1 = arith.constant 0 : i32
    return %c0_i32, %arg0, %c0_i32_0 : i32, i32, i32
  }
  func.func @transform_2(%arg0: i32) -> (i32, i32) {
    %c0_i32 = arith.constant 0 : i32
    %c0_i32_0 = arith.constant 0 : i32
    return %arg0, %c0_i32 : i32, i32
  }
  func.func @transform_3(%arg0: i32) -> (i32, i32) {
    %c0_i32 = arith.constant 0 : i32
    %c0_i32_0 = arith.constant 0 : i32
    %c0_i32_1 = arith.constant 0 : i32
    return %c0_i32, %c0_i32_0 : i32, i32
  }
  func.func @transform_4(%arg0: i32) -> (i32, i32) {
    %c0_i32 = arith.constant 0 : i32
    %c0_i32_0 = arith.constant 0 : i32
    %c0_i32_1 = arith.constant 0 : i32
    return %c0_i32, %c0_i32_0 : i32, i32
  }
  func.func @transform_5(%arg0: i32) -> (i32, i32) {
    %c0_i32 = arith.constant 0 : i32
    %c0_i32_0 = arith.constant 0 : i32
    %c0_i32_1 = arith.constant 0 : i32
    return %c0_i32, %c0_i32_0 : i32, i32
  }
  func.func @transform_6(%arg0: i32) -> (i32, i32) {
    %c0_i32 = arith.constant 0 : i32
    %c0_i32_0 = arith.constant 0 : i32
    %c0_i32_1 = arith.constant 0 : i32
    return %c0_i32, %c0_i32_0 : i32, i32
  }
  func.func @transform_7(%arg0: i32) -> (i32, i32) {
    %c0_i32 = arith.constant 0 : i32
    %c0_i32_0 = arith.constant 0 : i32
    return %arg0, %c0_i32 : i32, i32
  }
}

</mosaic_0001>

<bundles_post_ra>
// kernel: tpu_custom_call.1
= control target key start
LH: loop header
LB: loop body
LE: loop exit
PB: predicated region body
PF: predicated region fallthrough
CT: control target
= control target key end

     0   :  { %s2076_s0 = inlined_call_operand.hbm [shape: bf16[4,32,128], index: 0, kind: input, shape index: {}]   ;;  %s2077_s1 = inlined_call_operand.hbm [shape: bf16[5,32,128], index: 1, kind: input, shape index: {}]   ;;  %s2078_s2 = inlined_call_operand.hbm [shape: bf16[32,128], index: 2, kind: input, shape index: {}]   ;;  %s2079_s3 = inlined_call_operand.hbm [shape: bf16[128,128], index: 3, kind: input, shape index: {}]   ;;  %s2080_s4 = inlined_call_operand.vmem [shape: f32[1,128], index: 4, kind: input, shape index: {}]   ;;  %s2081_s5 = inlined_call_operand.hbm [shape: bf16[384,128], index: 5, kind: input, shape index: {}]   ;;  %s2082_s6 = inlined_call_operand.vmem [shape: f32[1,128], index: 6, kind: input, shape index: {}]   ;;  %s2083_s7 = inlined_call_operand.hbm [shape: bf16[32,128], index: 7, kind: output, shape index: {}]  }
   0x1   :  { %2092 = sst [smem:[#allocation25_spill]] %s2076_s0 }
   0x2   :  { %2093 = sst [smem:[#allocation26_spill]] %s2077_s1 }
   0x3   :  { %12 = vsyncpa [#allocation3], 0 }
   0x4   :  { %14 = vsyncpa [#allocation3 + $0x1], 0 }
   0x5   :  { %15 = vsyncpa [#allocation6], 0 }
   0x6   :  { %17 = vsyncpa [#allocation6 + $0x1], 0 }
   0x7   :  { %18 = vsyncpa [#allocation9], 0 }
   0x8   :  { %19 = vsyncpa [#allocation4], 0 }
   0x9   :  { %21 = vsyncpa [#allocation4 + $0x1], 0  ;;  %s1745_s24 = smov 0   ;;  %s1747_s25 = smov 0  }
   0xa   :  { %s1749_s26 = smov 0   ;;  %s1751_s27 = smov 0  }
   0xb LB: > { %s1766_s28 = sadd.s32 4294967295, %s1679_s27   ;;  %s1158_s29 = sadd.s32 4294967294, %s1679_s27   ;;  %s1679_s27 = sphi %s1751_s27, %s2113_s27   ;;  %s1675_s26 = sphi %s1749_s26, %s2117_s26   ;;  %s1671_s25 = sphi %s1747_s25, %s2116_s25   ;;  %s1667_s24 = sphi %s1745_s24, %s2115_s24  }
   0xc   : > { %s1770_s30 = sadd.s32 1, %s1679_s27   ;;  %s34_s8 = sadd.s32 1, %s1675_s26 }
   0xd   : > { %2094 = sst [smem:[#allocation22_spill]] %s1770_s30  ;;  %s31_s9 = ssub.s32 %s1679_s27, %s1770_s30 }
   0xe   : > { %p41_p0 = scmp.ne.s32.totalorder %s1675_s26, %s1671_s25  ;;  %p32_p1 = scmp.eq.s32.totalorder %s31_s9, 0 }
   0xf   : > { %p42_p2 = scmp.eq.s32.totalorder %s1679_s27, 0  ;;  %p47_p3 = scmp.ne.s32.totalorder %s1671_s25, %s1667_s24 }
  0x10   : > { %p2084_p4 = scmp.eq.s32.totalorder %s1766_s28, 0  ;;  %p207_p7 = scmp.eq.s32.totalorder %s1766_s28, 1 }
  0x11   : > { %s1782_s10 = scalar_select %p32_p1, %s1675_s26, %s34_s8  }
  0x12   : > { %p1784_p5 = por %p42_p2, %p41_p0  ;;  %p1790_p6 = por %p2084_p4, %p47_p3 }
  0x13   : > { %2095 = sst [smem:[#allocation23_spill]] %s1782_s10  ;;  %p213_p8 = scmp.eq.s32.totalorder %s1158_s29, 1 }
  0x14   : > { %s2096_s11 = scalar_select %p1784_p5, 1, 0 }
  0x15   : > { %s2097_s12 = scalar_select %p1790_p6, 1, 0 }
  0x16   : > { %p1159_p9 = scmp.ge.s32.totalorder %s1679_s27, 1  ;;  %p220_p10 = scmp.lt.s32.totalorder %s1679_s27, 3 }
  0x17   : > { %p1797_p11 = por %p207_p7, %p41_p0  ;;  %p1801_p12 = por %p213_p8, %p47_p3 }
  0x18   : > { %p1805_p13 = pnand %p1159_p9, %p220_p10  ;;  %s1681_s16 = smov [#allocation8]  }
  0x19   : > { %s2098_s13 = scalar_select %p1797_p11, 1, 0 }
  0x1a   : > { %s2099_s14 = scalar_select %p1801_p12, 1, 0 }
  0x1b   : > { %s2101_s15 = scalar_select %p1805_p13, 1, 0 }
  0x1c   : > { %2100 = sst [smem:[#allocation24_spill]] %s2099_s14  ;;  %p1395_p1 = pneg %p1805_p13 }
  0x1d   : > { %s232_s17 = sshll.u32 %s1681_s16, 4  ;;  %s1682_s19 = smov [#allocation10]   ;;  %s233_s17 = int_to_ptr.vmem [resolvable:$true] %s232_s17 }
  0x1e   : > { %p1813_p2 = pnand %p1395_p1, %p2084_p4  ;;  %s248_s20 = sshll.u32 %s1682_s19, 4  ;;  %s1817_s20 = int_to_ptr.vmem [resolvable:$true] %s248_s20 }
  0x1f   : > { %s1521_s23 = scalar_lea.hbm %s2079_s3, 1024 }
  0x20   : > { %p1522_p0 = scmp.ne.s32.totalorder %s2079_s3, %s1521_s23  ;;  %p1523_p3 = pneg %p1813_p2 }
  0x21   : > { %p1528_p9 = scmp.lt.u32.totalorder %s1521_s23, %s2079_s3 }
  0x22   : > { %p1524_p7 = pnand %p1523_p3, %p1522_p0 }
  0x24   : > { %p1525_p8 = pneg %p1524_p7 }
  0x26   : > { %p1530_p10 = pnand %p1528_p9, %p1525_p8 }
  0x28   : > { %1533 = shalt.err (!%p1530_p10)
}
  0x29   : > { %s1534_s19 = scalar_lea.vmem %s233_s17, 1024  ;;  %p1542_p11 = scmp.lt.s32.totalorder %s233_s17, %s233_s17 }
  0x2a   : > { %p1535_p1 = scmp.ne.s32.totalorder %s233_s17, %s1534_s19  ;;  %p1543_p6 = scmp.lt.s32.totalorder %s1534_s19, %s1534_s19 }
  0x2c   : > { %p1537_p4 = pnand %p1535_p1, %p1523_p3  ;;  %p1544_p13 = por %p1543_p6, %p1542_p11 }
  0x2e   : > { %p1538_p12 = pneg %p1537_p4 }
  0x30   : > { %p1545_p5 = pnand %p1544_p13, %p1538_p12 }
  0x32   : > { %1548 = shalt.err (!%p1545_p5)
}
  0x33   : > { %s1683_s21 = smov 64   ;;  %s1684_s22 = smov 4  }
  0x34   : > { %1398 = dma.hbm_to_vmem [thread:$0]  (!%p1813_p2), %s2079_s3, 1024, %s233_s17, [#allocation9], %s1683_s21, %s1683_s21, %s1684_s22  }
  0x35   : > { %s1549_s16 = scalar_lea.hbm %s2081_s5, 3072 }
  0x36   : > { %p1550_p4 = scmp.ne.s32.totalorder %s2081_s5, %s1549_s16  ;;  %p1556_p11 = scmp.lt.u32.totalorder %s1549_s16, %s2081_s5 }
  0x38   : > { %p1552_p5 = pnand %p1550_p4, %p1523_p3 }
  0x3a   : > { %p1553_p6 = pneg %p1552_p5 }
  0x3c   : > { %p1558_p12 = pnand %p1556_p11, %p1553_p6 }
  0x3e   : > { %1561 = shalt.err (!%p1558_p12)
}
  0x3f   : > { %s1562_s17 = scalar_lea.vmem %s1817_s20, 3072  ;;  %p1570_p8 = scmp.lt.s32.totalorder %s1817_s20, %s1817_s20 }
  0x40   : > { %p1563_p13 = scmp.ne.s32.totalorder %s1817_s20, %s1562_s17  ;;  %p1571_p9 = scmp.lt.s32.totalorder %s1562_s17, %s1562_s17 }
  0x42   : > { %p1565_p0 = pnand %p1563_p13, %p1523_p3  ;;  %p1572_p10 = por %p1571_p9, %p1570_p8 }
  0x44   : > { %p1566_p7 = pneg %p1565_p0 }
  0x46   : > { %p1573_p1 = pnand %p1572_p10, %p1566_p7 }
  0x48   : > { %1576 = shalt.err (!%p1573_p1)
}
  0x49   : > { %1401 = dma.hbm_to_vmem [thread:$0]  (!%p1813_p2), %s2081_s5, 3072, %s1817_s20, [#allocation9], %s1683_s21, %s1683_s21, %s1684_s22  }
  0x4a   : > { %p1162_p4 = scmp.ge.s32.totalorder %s1679_s27, 2 }
  0x4c   : > { %261 = sbr.rel (%p1162_p4) target bundleno = 136 (0x88), region = 32 }
  0x53   : > { %s1870_s14 = sand.u32 1, %s1675_s26   ;;  %s1873_s18 = sshll.u32 %s1679_s27, 7 }
  0x54   : > { %s1163_s20 = sshll.u32 %s1870_s14, 5  ;;  %s2103_s0 = sld [smem:[#allocation25_spill]] }
  0x55   : > { %p2104_p2 = scmp.ne.s32.totalorder %s2096_s11, 0  ;;  %s269_s8 = scalar_lea.vmem [#allocation2], %s1163_s20 }
  0x56   : > { %s288_s9 = sshll.u32 %s269_s8, 4  ;;  %s1685_s19 = smov 256   ;;  %s289_s9 = int_to_ptr.vmem [resolvable:$true] %s288_s9 }
  0x57   : > { %s1369_s29 = scalar_select %p2104_p2, [#allocation0], [#allocation16] }
  0x58   : > { %1370 = sst [smem:[#allocation13]] (%p2104_p2), %s1685_s19  ;;  %s1686_s17 = smov 128  }
  0x59   : > { %s280_s16 = sld [smem:[%s1369_s29]]   ;;  %s1687_s30 = smov 2  }
  0x5a   : > { %s275_s23 = scalar_lea.hbm %s2103_s0, %s1873_s18  ;;  %1371 = sst [smem:[#allocation13 + $0x1]] (%p2104_p2), %s1686_s17 }
  0x5b   : > { %1372 = sst [smem:[#allocation13 + $0x2]] (%p2104_p2), %s1687_s30  ;;  %s1688_s10 = smov 64  }
  0x5c   : > { %1373 = sst [smem:[#allocation13 + $0x3]] (%p2104_p2), %s1688_s10  ;;  %s1689_s21 = smov 4  }
  0x5d   : > { %1374 = sst [smem:[#allocation13 + $0x4]] (%p2104_p2), %s1688_s10  ;;  %s266_s29 = scalar_lea.sflag [#allocation3], %s1870_s14 }
  0x5e   : > { %1375 = sst [smem:[#allocation13 + $0x5]] (%p2104_p2), %s1689_s21  ;;  %s1690_s8 = smov [#allocation12]  }
  0x5f   : > { %s1166_s20 = sshll.u32 %s280_s16, 26 }
  0x60   : > { %s1167_s22 = sadd.s32 134217728, %s1166_s20 }
  0x61   : > { %1376 = dma.general (%p2104_p2), %s275_s23, 512, %s289_s9, %s266_s29, %s1690_s8, [#allocation13], %s1167_s22, 0  }
  0x62   : > { %s311_s19 = sand.u32 1, %s1679_s27   ;;  %s1363_s17 = smul.u32 40, %s1870_s14 }
  0x63   : > { %s1377_s16 = scalar_select %p2104_p2, [#allocation0], [#allocation17] }
  0x64   : > { %s2105_s1 = sld [smem:[#allocation26_spill]]  ;;  %s1691_s21 = smov 256  }
  0x65   : > { %1378 = sst [smem:[#allocation15]] (%p2104_p2), %s1691_s21  ;;  %s315_s9 = scalar_lea.vmem [#allocation5], %s1363_s17 }
  0x66   : > { %s326_s23 = sld [smem:[%s1377_s16]]   ;;  %s334_s22 = sshll.u32 %s315_s9, 4  ;;  %s335_s22 = int_to_ptr.vmem [resolvable:$true] %s334_s22 }
  0x67   : > { %s1692_s29 = smov 128   ;;  %s1693_s8 = smov 2  }
  0x68   : > { %1379 = sst [smem:[#allocation15 + $0x1]] (%p2104_p2), %s1692_s29  ;;  %s1694_s0 = smov 64  }
  0x69   : > { %1380 = sst [smem:[#allocation15 + $0x2]] (%p2104_p2), %s1693_s8  ;;  %s1695_s10 = smov 4  }
  0x6a   : > { %s321_s20 = scalar_lea.hbm %s2105_s1, %s1873_s18  ;;  %1381 = sst [smem:[#allocation15 + $0x3]] (%p2104_p2), %s1694_s0 }
  0x6b   : > { %1382 = sst [smem:[#allocation15 + $0x4]] (%p2104_p2), %s1694_s0  ;;  %s1917_s17 = scalar_lea.sflag [#allocation6], %s311_s19 }
  0x6c   : > { %s1170_s30 = sshll.u32 %s326_s23, 26  ;;  %1383 = sst [smem:[#allocation15 + $0x5]] (%p2104_p2), %s1695_s10 }
  0x6d   : > { %s1171_s16 = sadd.s32 134217728, %s1170_s30  ;;  %s1696_s21 = smov [#allocation14]  }
  0x6e   : > { %1384 = dma.general (%p2104_p2), %s321_s20, 640, %s335_s22, %s1917_s17, %s1696_s21, [#allocation15], %s1171_s16, 0  }
  0x6f   : > { %s1172_s9 = sshll.u32 %s1870_s14, 3  ;;  %s1927_s1 = scalar_lea.hbm %s2078_s2, %s1873_s18 }
  0x70   : > { %s361_s0 = scalar_lea.vmem [#allocation7], %s1172_s9  ;;  %s1577_s23 = scalar_lea.hbm %s1927_s1, 128 }
  0x71   : > { %s368_s19 = sshll.u32 %s361_s0, 4  ;;  %p1578_p3 = scmp.ne.s32.totalorder %s1927_s1, %s1577_s23  ;;  %s1929_s19 = int_to_ptr.vmem [resolvable:$true] %s368_s19 }
  0x72   : > { %s1581_s22 = scalar_lea.hbm %s2078_s2, 256  ;;  %p1582_p11 = scmp.lt.u32.totalorder %s1927_s1, %s2078_s2 }
  0x73   : > { %p1579_p5 = pnand %p1578_p3, %p2104_p2  ;;  %p1583_p12 = scmp.lt.u32.totalorder %s1581_s22, %s1577_s23 }
  0x74   : > { %p1585_p0 = scmp.lt.u32.totalorder %s1577_s23, %s1927_s1 }
  0x75   : > { %p1580_p6 = pneg %p1579_p5  ;;  %p1584_p13 = por %p1583_p12, %p1582_p11 }
  0x77   : > { %p1586_p7 = por %p1585_p0, %p1584_p13 }
  0x79   : > { %p1587_p8 = pnand %p1586_p7, %p1580_p6 }
  0x7b   : > { %1590 = shalt.err (!%p1587_p8)
}
  0x7c   : > { %s1591_s10 = scalar_lea.vmem %s1929_s19, 128  ;;  %s1697_s16 = smov [#allocation7]  }
  0x7d   : > { %p1592_p9 = scmp.ne.s32.totalorder %s1929_s19, %s1591_s10  ;;  %s1595_s21 = sshll.u32 %s1697_s16, 4  ;;  %s1596_s21 = int_to_ptr.vmem [resolvable:$false] %s1595_s21 }
  0x7e   : > { %s1597_s9 = scalar_lea.vmem %s1596_s21, 256  ;;  %p1598_p3 = scmp.lt.s32.totalorder %s1929_s19, %s1596_s21 }
  0x7f   : > { %p1593_p10 = pnand %p1592_p9, %p2104_p2  ;;  %p1599_p5 = scmp.lt.s32.totalorder %s1597_s9, %s1591_s10 }
  0x81   : > { %p1594_p1 = pneg %p1593_p10  ;;  %p1600_p11 = por %p1599_p5, %p1598_p3 }
  0x83   : > { %p1601_p12 = pnand %p1600_p11, %p1594_p1 }
  0x85   : > { %1604 = shalt.err (!%p1601_p12)
}
  0x86   : > { %s1698_s29 = smov 64   ;;  %s1699_s8 = smov 4  }
  0x87   : > { %1385 = dma.hbm_to_vmem [thread:$0]  (%p2104_p2), %s1927_s1, 128, %s1929_s19, %s1917_s17, %s1698_s29, %s1698_s29, %s1699_s8  }
  0x88 PF: > { %p2106_p6 = scmp.ne.s32.totalorder %s2101_s15, 0 }
  0x89   : > { %s1956_s0 = sand.u32 (!%p2106_p6), 1, %s1671_s25   ;;  %p2107_p13 = scmp.ne.s32.totalorder (!%p2106_p6), %s2097_s12, 0 }
  0x8a   : > { %380 = sbr.rel (%p2106_p6) target bundleno = 840 (0x348), region = 48  ;;  %s1176_s23 = sshll.u32 (!%p2106_p6), %s1956_s0, 5 }
  0x8b   : > { %s383_s20 = scalar_lea.sflag (!%p2106_p6), [#allocation3], %s1956_s0  ;;  %s1960_s14 = scalar_lea.vmem (!%p2106_p6), [#allocation2], %s1176_s23 }
  0x91   : > { %1650 = dma.done.wait (%p2107_p13), %s383_s20, 512  }
  0x92   : > { %1652 = vsyncadd (%p2107_p13), %s383_s20, 4294966784  ;;  %s391_s1 = sand.u32 1, %s1766_s28   ;;  %s1364_s11 = smul.u32 40, %s1956_s0 }
  0x93   : > { %s392_s15 = scalar_lea.sflag [#allocation6], %s391_s1 }
  0x94   : > { %s1968_s17 = scalar_lea.vmem [#allocation5], %s1364_s11 }
  0x95   : > { %1654 = dma.done.wait (%p2107_p13), %s392_s15, 768  }
  0x96   : > { %1656 = vsyncadd (%p2107_p13), %s392_s15, 4294966528  ;;  %s1177_s19 = sshll.u32 %s1956_s0, 3  ;;  %p2108_p2 = scmp.eq.s32.totalorder %s1766_s28, 0 }
  0x97   : > { %s1977_s22 = scalar_lea.vmem [#allocation7], %s1177_s19 }
  0x98   : > { %1658 = dma.done.wait (%p2108_p2), [#allocation9], 4096   ;;  %p2109_p0 = pmov %p2108_p2 }
  0x99   : > { %v1700_v0 = vmov 0.0   ;;  %vm1701_vm0 = vmmov 0   ;;  %v1465_v1 = vld [vmem:[#allocation8] sm:$0xff]   ;;  %v1466_v2 = vld [vmem:[#allocation8 + $0x8] sm:$0xff]   ;;  %v1467_v3 = vld [vmem:[#allocation8 + $0x10] sm:$0xff]   ;;  %s452_s16 = scalar_lea.vmem [#allocation11], %s1177_s19 }
  0x9a   : > { %1660 = vsyncadd (%p2109_p0), [#allocation9], 4294963200  ;;  %1323 = vmatprep.subr.bf16.mxu0 %v1700_v0  ;;  %1339 = vmatprep.mubr.msk.bf16.mxu0 %vm1701_vm0, %v1700_v0  ;;  %v1468_v4 = vld [vmem:[#allocation8 + $0x18] sm:$0xff]   ;;  %v1469_v5 = vld [vmem:[#allocation8 + $0x20] sm:$0xff]   ;;  %s1023_s21 = sshll.u32 %s452_s16, 4  ;;  %s1244_s9 = sshll.u32 %s1766_s28, 7  ;;  %s2027_s21 = int_to_ptr.vmem [resolvable:$true] %s1023_s21 }
  0x9b   : > { %1324 = vmatpush3.bf16.msra.mxu0 %v1465_v1  ;;  %v1470_v6 = vld [vmem:[#allocation8 + $0x28] sm:$0xff]   ;;  %v1471_v7 = vld [vmem:[#allocation8 + $0x30] sm:$0xff]   ;;  %v1472_v8 = vld [vmem:[#allocation8 + $0x38] sm:$0xff]   ;;  %s2032_s23 = scalar_lea.hbm %s2083_s7, %s1244_s9  ;;  %s1010_s20 = scalar_lea.sflag [#allocation4], %s1956_s0 }
  0x9c   : > { %1325 = vmatprep.subr.bf16.mxu0 %v1700_v0  ;;  %v1473_v9 = vld [vmem:[%s1968_s17 + $0x20] sm:$0xff]   ;;  %v1278_v10 = vld [vmem:[%s1968_s17 + $0x8] sm:$0xff]   ;;  %v1279_v15 = vld [vmem:[%s1968_s17 + $0x10] sm:$0xff]   ;;  %p2110_p8 = scmp.ne.s32.totalorder %s2098_s13, 0  ;;  %s1702_s28 = smov [#allocation11]  }
  0x9d   : > { %v1246_v11 = vld [vmem:[%s1968_s17] sm:$0xff]   ;;  %v1251_v13 = vunpack.c.l.bf16 %v1278_v10  ;;  %v1255_v20 = vunpack.c.l.bf16 %v1279_v15  ;;  %v1252_v25 = vunpack.c.h.bf16 %v1278_v10  ;;  %v1256_v28 = vunpack.c.h.bf16 %v1279_v15  ;;  %v1280_v30 = vld [vmem:[%s1968_s17 + $0x18] sm:$0xff]   ;;  %v1478_v41 = vld [vmem:[#allocation10 + $0x50] sm:$0xff]   ;;  %s1609_s1 = sshll.u32 %s1702_s28, 4  ;;  %s1610_s1 = int_to_ptr.vmem [resolvable:$false] %s1609_s1 }
  0x9e   : > { %v1183_v12 = vld [vmem:[%s2080_s4] ss:$0 sm:$0xff]  ;;  %v1247_v14 = vunpack.c.l.bf16 %v1246_v11  ;;  %v1248_v29 = vunpack.c.h.bf16 %v1246_v11  ;;  %v1260_v33 = vunpack.c.h.bf16 %v1280_v30  ;;  %v1259_v34 = vunpack.c.l.bf16 %v1280_v30  ;;  %v1476_v39 = vld [vmem:[#allocation10 + $0x48] sm:$0xff]   ;;  %v1479_v42 = vld [vmem:[#allocation10 + $0x10] sm:$0xff]   ;;  %s1611_s11 = scalar_lea.vmem %s1610_s1, 256  ;;  %p1612_p1 = scmp.lt.s32.totalorder %s2027_s21, %s1610_s1 }
  0x9f   : > { %1326 = vmatpush3.bf16.msra.mxu0 %v1466_v2  ;;  %v1474_v37 = vld [vmem:[#allocation10 + $0x40] sm:$0xff]   ;;  %v1477_v40 = vld [vmem:[#allocation10 + $0x8] sm:$0xff]   ;;  %v1481_v44 = vld [vmem:[#allocation10 + $0x58] sm:$0xff]  }
  0xa0   : > { %1327 = vmatprep.subr.bf16.mxu0 %v1700_v0  ;;  %v1475_v38 = vld [vmem:[#allocation10] sm:$0xff]   ;;  %1292 = vmatprep.subr.bf16.mxu1 %v1474_v37  ;;  %v1482_v45 = vld [vmem:[#allocation10 + $0x18] sm:$0xff]   ;;  %v1483_v46 = vld [vmem:[#allocation10 + $0x88] sm:$0xff]  }
  0xa1   : > { %1293 = vmatpush3.bf16.msra.mxu1 %v1475_v38  ;;  %v1480_v43 = vld [vmem:[#allocation10 + $0x80] sm:$0xff]   ;;  %v1486_v49 = vld [vmem:[#allocation10 + $0x90] sm:$0xff]   ;;  %v1487_v50 = vld [vmem:[#allocation10 + $0x68] sm:$0xff]  }
  0xa2   : > { %1294 = vmatprep.subr.bf16.mxu1 %v1476_v39  ;;  %v1484_v47 = vld [vmem:[#allocation10 + $0x60] sm:$0xff]   ;;  %v1488_v51 = vld [vmem:[#allocation10 + $0x28] sm:$0xff]   ;;  %v1489_v52 = vld [vmem:[#allocation10 + $0x98] sm:$0xff]  }
  0xa3   : > { %1328 = vmatpush3.bf16.msra.mxu0 %v1467_v3  ;;  %v1485_v48 = vld [vmem:[#allocation10 + $0x20] sm:$0xff]   ;;  %v1490_v53 = vld [vmem:[#allocation10 + $0x70] sm:$0xff]   ;;  %v1493_v56 = vld [vmem:[#allocation10 + $0x78] sm:$0xff]  }
  0xa4   : > { %1329 = vmatprep.subr.bf16.mxu0 %v1700_v0  ;;  %v1491_v54 = vld [vmem:[#allocation10 + $0x30] sm:$0xff]   ;;  %v1492_v55 = vld [vmem:[#allocation10 + $0xa0] sm:$0xff]   ;;  %v1494_v57 = vld [vmem:[#allocation10 + $0x38] sm:$0xff]  }
  0xa5   : > { %1295 = vmatpush3.bf16.msra.mxu1 %v1477_v40  ;;  %v1495_v58 = vld [vmem:[#allocation10 + $0xa8] sm:$0xff]   ;;  %v2010_v59 = vld [vmem:[%s1960_s14 + $0x18] sm:$0xff]   ;;  %v1498_v61 = vld [vmem:[#allocation10 + $0xb0] sm:$0xff]  }
  0xa6   : > { %1296 = vmatprep.subr.bf16.mxu1 %v1478_v41  ;;  %v1497_v60 = vld [vmem:[%s1977_s22] sm:$0xff]   ;;  %949 = vmatprep.mubr.bf16.mxu1 %v2010_v59 }
  0xa7   : > { %1330 = vmatpush3.bf16.msra.mxu0 %v1468_v4  ;;  %v1499_v62 = vld [vmem:[#allocation10 + $0xb8] sm:$0xff]  }
  0xa8   : > { %1331 = vmatprep.subr.bf16.mxu0 %v1700_v0 }
  0xa9   : > { %1297 = vmatpush3.bf16.msra.mxu1 %v1479_v42 }
  0xaa   : > { %1298 = vmatprep.subr.bf16.mxu1 %v1481_v44  ;;  %v1281_v44 = vld [vmem:[%s1960_s14 + $0x8] sm:$0xff]  }
  0xab   : > { %1332 = vmatpush3.bf16.msra.mxu0 %v1469_v5 }
  0xac   : > { %1333 = vmatprep.subr.bf16.mxu0 %v1700_v0 }
  0xad   : > { %1299 = vmatpush3.bf16.msra.mxu1 %v1482_v45  ;;  %v1282_v45 = vld [vmem:[%s1960_s14 + $0x10] sm:$0xff]  }
  0xae   : > { %1300 = vmatprep.subr.bf16.mxu1 %v1484_v47  ;;  %v1268_v47 = vunpack.c.h.bf16 %v1281_v44 }
  0xaf   : > { %1334 = vmatpush3.bf16.msra.mxu0 %v1470_v6 }
  0xb0   : > { %1335 = vmatprep.subr.bf16.mxu0 %v1700_v0 }
  0xb1   : > { %1301 = vmatpush3.bf16.msra.mxu1 %v1485_v48 }
  0xb2   : > { %1302 = vmatprep.subr.bf16.mxu1 %v1487_v50 }
  0xb3   : > { %1336 = vmatpush3.bf16.msra.mxu0 %v1471_v7 }
  0xb4   : > { %1337 = vmatprep.subr.bf16.mxu0 %v1700_v0 }
  0xb5   : > { %1303 = vmatpush3.bf16.msra.mxu1 %v1488_v51 }
  0xb6   : > { %1304 = vmatprep.subr.bf16.mxu1 %v1490_v53 }
  0xb7   : > { %1338 = vmatpush3.bf16.msra.mxu0 %v1472_v8 }
  0xb8   : > { %1343 = vmatprep.subr.bf16.mxu0 %v1700_v0 }
  0xb9   : > { %1305 = vmatpush3.bf16.msra.mxu1 %v1491_v54 }
  0xba   : > { %1340 = vmatmul.mubr.bf16.vlgmr.msra.gmra.mrb[0].mxu0 %v1473_v9  ;;  %1306 = vmatprep.subr.bf16.mxu1 %v1493_v56 }
  0xbb   : > { %1359 = vmatprep.mubr.msk.bf16.mxu0 %vm1701_vm0, %v1700_v0  ;;  %1344 = vmatpush3.bf16.msra.mxu0 %v1480_v43  ;;  %v1262_v43 = vld [vmem:[%s1960_s14] sm:$0xff]   ;;  %s1605_s14 = scalar_lea.vmem %s2027_s21, 128 }
  0xbc   : > { %1345 = vmatprep.subr.bf16.mxu0 %v1700_v0  ;;  %v1263_v53 = vunpack.c.l.bf16 %v1262_v43  ;;  %p1606_p7 = scmp.ne.s32.totalorder %s2027_s21, %s1605_s14  ;;  %p1613_p3 = scmp.lt.s32.totalorder %s1611_s11, %s1605_s14 }
  0xbd   : > { %1307 = vmatpush3.bf16.msra.mxu1 %v1494_v57 }
  0xbe   : > { %p1607_p9 = pnand %p1606_p7, %p2110_p8  ;;  %p1614_p5 = por %p1613_p3, %p1612_p1 }
  0xbf   : > { %1346 = vmatpush3.bf16.msra.mxu0 %v1483_v46  ;;  %v1264_v46 = vunpack.c.h.bf16 %v1262_v43 }
  0xc0   : > { %1347 = vmatprep.subr.bf16.mxu0 %v1700_v0  ;;  %950 = vmatmul.mubr.bf16.vlgmr.msra.gmra.mrb[0].mxu1 %v1497_v60  ;;  %p1608_p10 = pneg %p1607_p9 }
  0xc2   : > { %p1615_p11 = pnand %p1614_p5, %p1608_p10 }
  0xc3   : > { %1348 = vmatpush3.bf16.msra.mxu0 %v1486_v49  ;;  %v1272_v49 = vunpack.c.h.bf16 %v1282_v45 }
  0xc4   : > { %1349 = vmatprep.subr.bf16.mxu0 %v1700_v0 }
  0xc7   : > { %1350 = vmatpush3.bf16.msra.mxu0 %v1489_v52 }
  0xc8   : > { %1351 = vmatprep.subr.bf16.mxu0 %v1700_v0 }
  0xcb   : > { %1352 = vmatpush3.bf16.msra.mxu0 %v1492_v55  ;;  %v1267_v55 = vunpack.c.l.bf16 %v1281_v44 }
  0xcc   : > { %1353 = vmatprep.subr.bf16.mxu0 %v1700_v0 }
  0xcf   : > { %1354 = vmatpush3.bf16.msra.mxu0 %v1495_v58  ;;  %v1271_v58 = vunpack.c.l.bf16 %v1282_v45 }
  0xd0   : > { %1355 = vmatprep.subr.bf16.mxu0 %v1700_v0 }
  0xd3   : > { %1356 = vmatpush3.bf16.msra.mxu0 %v1498_v61 }
  0xd4   : > { %1357 = vmatprep.subr.bf16.mxu0 %v1700_v0 }
  0xd7   : > { %1358 = vmatpush3.bf16.msra.mxu0 %v1499_v62  ;;  %v698_v62 = vunpack.c.h.bf16 %v2010_v59 }
 0x18d   : > { %v572_v16 = vpop.f32.mrb[0].mxu0 }
 0x18e   : > { %v573_v17 = vadd.f32 %v1183_v12, %v572_v16  ;;  %v1341_v18 = vpop.f32.mrb[1].mxu0 }
 0x18f   : > { %v575_v19 = vpop.f32.mrb[2].mxu0 }
 0x190   : > { %v576_v21 = vadd.f32 %v1183_v12, %v575_v19  ;;  %v1342_v22 = vpop.f32.mrb[3].mxu0  ;;  %v594_v23 = vmul.f32 %v1251_v13, %v573_v17  ;;  %v583_v24 = vmul.f32 %v1247_v14, %v573_v17  ;;  %v605_v26 = vmul.f32 %v1255_v20, %v573_v17 }
 0x191   : > { %v616_v36 = vmul.f32 %v1259_v34, %v573_v17 }
 0x192   : > { %596 = vadd.xlane.f32.xlu1 %v594_v23  ;;  %585 = vadd.xlane.f32.xlu0 %v583_v24  ;;  %v595_v27 = vmul.f32 %v1252_v25, %v576_v21  ;;  %v606_v31 = vmul.f32 %v1256_v28, %v576_v21  ;;  %v584_v32 = vmul.f32 %v1248_v29, %v576_v21 }
 0x193   : > { %v617_v35 = vmul.f32 %v1260_v33, %v576_v21 }
 0x196   : > { %607 = vadd.xlane.f32.xlu0 %v605_v26  ;;  %598 = vadd.xlane.f32.xlu1 %v595_v27 }
 0x19a   : > { %609 = vadd.xlane.f32.xlu1 %v606_v31  ;;  %587 = vadd.xlane.f32.xlu0 %v584_v32 }
 0x19e   : > { %620 = vadd.xlane.f32.xlu1 %v617_v35  ;;  %618 = vadd.xlane.f32.xlu0 %v616_v36 }
 0x21f   : > { %v597_v63 = vpop.xlane.xlu1 %596  ;;  %v586_v1 = vpop.xlane.xlu0 %585 }
 0x220   : > { %v622_v6 = vmax.f32 %v586_v1, %v597_v63 }
 0x223   : > { %v608_v2 = vpop.xlane.xlu0 %607  ;;  %v599_v3 = vpop.xlane.xlu1 %598 }
 0x224   : > { %v624_v8 = vmax.f32 %v622_v6, %v608_v2 }
 0x227   : > { %v610_v4 = vpop.xlane.xlu1 %609  ;;  %v588_v5 = vpop.xlane.xlu0 %587 }
 0x228   : > { %v623_v7 = vmax.f32 %v588_v5, %v599_v3 }
 0x22a   : > { %v625_v9 = vmax.f32 %v623_v7, %v610_v4 }
 0x22b   : > { %v621_v10 = vpop.xlane.xlu1 %620  ;;  %v619_v11 = vpop.xlane.xlu0 %618 }
 0x22c   : > { %v627_v12 = vmax.f32 %v625_v9, %v621_v10  ;;  %v626_v13 = vmax.f32 %v624_v8, %v619_v11 }
 0x22e   : > { %v629_v14 = vsub.f32 %v588_v5, %v627_v12  ;;  %v635_v15 = vsub.f32 %v599_v3, %v627_v12  ;;  %v641_v16 = vsub.f32 %v610_v4, %v627_v12  ;;  %v647_v0 = vsub.f32 %v621_v10, %v627_v12 }
 0x22f   : > { %v628_v17 = vsub.f32 %v586_v1, %v626_v13  ;;  %v634_v18 = vsub.f32 %v597_v63, %v626_v13  ;;  %v640_v23 = vsub.f32 %v608_v2, %v626_v13  ;;  %v646_v26 = vsub.f32 %v619_v11, %v626_v13 }
 0x230   : > { %v632_v19 = vmul.f32 1.442695, %v629_v14  ;;  %v638_v20 = vmul.f32 1.442695, %v635_v15  ;;  %v644_v21 = vmul.f32 1.442695, %v641_v16  ;;  %v697_v4 = vunpack.c.l.bf16 %v2010_v59 }
 0x231   : > { %v650_v22 = vmul.f32 1.442695, %v647_v0  ;;  %v630_v24 = vmul.f32 1.442695, %v628_v17  ;;  %v636_v25 = vmul.f32 1.442695, %v634_v18 }
 0x232   : > { %1501 = vpow2.f32 %v632_v19  ;;  %v642_v27 = vmul.f32 1.442695, %v640_v23  ;;  %v648_v28 = vmul.f32 1.442695, %v646_v26  ;;  %v1308_v0 = vpop.f32.mrb[0].mxu1 }
 0x233   : > { %1503 = vpow2.f32 %v638_v20  ;;  %v1309_v17 = vpop.f32.mrb[1].mxu1 }
 0x234   : > { %1505 = vpow2.f32 %v644_v21  ;;  %v1310_v18 = vadd.f32 %v1309_v17, %v1308_v0  ;;  %v1311_v19 = vpop.f32.mrb[2].mxu1  ;;  %v1207_v21 = vld [vmem:[%s2082_s6] ss:$0 sm:$0xff] }
 0x235   : > { %1507 = vpow2.f32 %v650_v22  ;;  %v1312_v59 = vpop.f32.mrb[3].mxu1 }
 0x236   : > { %1509 = vpow2.f32 %v630_v24  ;;  %v1313_v20 = vadd.f32 %v1312_v59, %v1311_v19  ;;  %v952_v22 = vadd.f32 %v1310_v18, %v1207_v21 }
 0x237   : > { %1511 = vpow2.f32 %v636_v25 }
 0x238   : > { %1513 = vpow2.f32 %v642_v27  ;;  %v955_v26 = vadd.f32 %v1313_v20, %v1207_v21 }
 0x239   : > { %1515 = vpow2.f32 %v648_v28 }
 0x23c   : > { %v1502_v29 = vpop.eup %1501 }
 0x23d   : > { %v1504_v30 = vpop.eup %1503 }
 0x23e   : > { %v1506_v31 = vpop.eup %1505  ;;  %v653_v32 = vadd.f32 %v1504_v30, %v1502_v29 }
 0x23f   : > { %v1508_v33 = vpop.eup %1507 }
 0x240   : > { %v1510_v34 = vpop.eup %1509  ;;  %v655_v35 = vadd.f32 %v1506_v31, %v653_v32 }
 0x241   : > { %v1512_v36 = vpop.eup %1511 }
 0x242   : > { %v657_v37 = vadd.f32 %v1508_v33, %v655_v35  ;;  %v652_v38 = vadd.f32 %v1512_v36, %v1510_v34  ;;  %v1514_v39 = vpop.eup %1513 }
 0x243   : > { %v1516_v41 = vpop.eup %1515 }
 0x244   : > { %1517 = vrcp.f32 %v657_v37  ;;  %v654_v40 = vadd.f32 %v1514_v39, %v652_v38 }
 0x246   : > { %v656_v42 = vadd.f32 %v1516_v41, %v654_v40 }
 0x248   : > { %1519 = vrcp.f32 %v656_v42 }
 0x24e   : > { %v1518_v48 = vpop.eup %1517 }
 0x24f   : > { %v666_v50 = vmul.f32 %v1518_v48, %v1502_v29  ;;  %v674_v51 = vmul.f32 %v1518_v48, %v1504_v30  ;;  %v685_v52 = vmul.f32 %v1518_v48, %v1506_v31  ;;  %v696_v61 = vmul.f32 %v1518_v48, %v1508_v33 }
 0x251   : > { %v672_v54 = vmul.f32 %v1264_v46, %v666_v50  ;;  %v681_v56 = vmul.f32 %v1268_v47, %v674_v51  ;;  %v692_v60 = vmul.f32 %v1272_v49, %v685_v52  ;;  %v700_v11 = vmul.f32 %v698_v62, %v696_v61 }
 0x252   : > { %v1520_v57 = vpop.eup %1519 }
 0x253   : > { %v665_v63 = vmul.f32 %v1520_v57, %v1510_v34  ;;  %v673_v1 = vmul.f32 %v1520_v57, %v1512_v36  ;;  %v683_v2 = vadd.f32 %v681_v56, %v672_v54  ;;  %v684_v3 = vmul.f32 %v1520_v57, %v1514_v39 }
 0x254   : > { %v695_v8 = vmul.f32 %v1520_v57, %v1516_v41 }
 0x255   : > { %v671_v5 = vmul.f32 %v1263_v53, %v665_v63  ;;  %v680_v6 = vmul.f32 %v1267_v55, %v673_v1  ;;  %v694_v7 = vadd.f32 %v692_v60, %v683_v2  ;;  %v691_v10 = vmul.f32 %v1271_v58, %v684_v3 }
 0x256   : > { %v699_v13 = vmul.f32 %v697_v4, %v695_v8 }
 0x257   : > { %v682_v9 = vadd.f32 %v680_v6, %v671_v5  ;;  %v702_v14 = vadd.f32 %v700_v11, %v694_v7 }
 0x259   : > { %v693_v12 = vadd.f32 %v691_v10, %v682_v9 }
 0x25b   : > { %v701_v15 = vadd.f32 %v699_v13, %v693_v12 }
 0x25d   : > { %v705_v16 = vpack.c.bf16 %v702_v14, %v701_v15 }
 0x25f   : > { %1360 = vmatmul.mubr.bf16.vlgmr.msra.gmra.mrb[4].mxu0 %v705_v16 }
 0x332   : > { %v992_v23 = vpop.f32.mrb[4].mxu0 }
 0x333   : > { %v993_v24 = vadd.f32 %v992_v23, %v952_v22  ;;  %v1361_v25 = vpop.f32.mrb[5].mxu0 }
 0x334   : > { %v995_v27 = vpop.f32.mrb[6].mxu0 }
 0x335   : > { %v996_v28 = vadd.f32 %v995_v27, %v955_v26  ;;  %v1362_v29 = vpop.f32.mrb[7].mxu0 }
 0x337   : > { %v1276_v30 = vpack.c.bf16 %v996_v28, %v993_v24 }
 0x339   : > { %1277 = vst [vmem:[%s452_s16] sm:$0xff] %v1276_v30  }
 0x33a   : > { %1618 = shalt.err (!%p1615_p11)
}
 0x33b   : > { %s1619_s15 = scalar_lea.hbm %s2032_s23, 128  ;;  %s1623_s22 = scalar_lea.hbm %s2083_s7, 256 }
 0x33c   : > { %p1620_p12 = scmp.ne.s32.totalorder %s2032_s23, %s1619_s15  ;;  %p1624_p2 = scmp.lt.u32.totalorder %s2032_s23, %s2083_s7 }
 0x33d   : > { %p1625_p0 = scmp.lt.u32.totalorder %s1623_s22, %s1619_s15  ;;  %p1627_p9 = scmp.lt.u32.totalorder %s1619_s15, %s2032_s23 }
 0x33e   : > { %p1621_p6 = pnand %p1620_p12, %p2110_p8 }
 0x33f   : > { %p1626_p7 = por %p1625_p0, %p1624_p2 }
 0x340   : > { %p1622_p13 = pneg %p1621_p6 }
 0x341   : > { %p1628_p10 = por %p1627_p9, %p1626_p7 }
 0x343   : > { %p1629_p1 = pnand %p1628_p10, %p1622_p13 }
 0x345   : > { %1632 = shalt.err (!%p1629_p1)
}
 0x346   : > { %s1703_s18 = smov 64   ;;  %s1704_s10 = smov 4  }
 0x347   : > { %1393 = dma.vmem_to_hbm [thread:$0]  (%p2110_p8), %s2027_s21, 128, %s2032_s23, %s1010_s20, %s1703_s18, %s1703_s18, %s1704_s10  }
 0x348 PF: > { %s2111_s16 = sld [smem:[#allocation24_spill]]  ;;  %s1038_s9 = sand.u32 1, %s1667_s24  }
 0x349   : > { %s1039_s29 = scalar_lea.sflag [#allocation4], %s1038_s9 }
 0x34e   : > { %p2112_p3 = scmp.ne.s32.totalorder %s2111_s16, 0 }
 0x350   : > { %p1403_p5 = pnand %p1162_p4, %p2112_p3 }
 0x352   : > { %1662 = dma.done.wait (!%p1403_p5), %s1039_s29, 128  }
 0x353   : > { %1664 = vsyncadd (!%p1403_p5), %s1039_s29, 4294967168  ;;  %s2113_s27 = sld [smem:[#allocation22_spill]]  ;;  %s2114_s8 = sld [smem:[#allocation23_spill]] }
 0x354   : > { %s2115_s24 = smov %s1671_s25  ;;  %s2116_s25 = smov %s1675_s26 }
 0x359   : > { %p24_p11 = scmp.ge.s32.totalorder %s2113_s27, 4   ;;  %s2117_s26 = smov %s2114_s8 }
 0x35b   :  { %26 = sbr.rel (!%p24_p11) target bundleno = 11 (0xb), region = 142 }
 0x362   :  { %1044 = vsyncpa [#allocation3], 1 }
 0x363   :  { %1046 = vsyncpa [#allocation3 + $0x1], 1 }
 0x364   :  { %1047 = vsyncpa [#allocation6], 1 }
 0x365   :  { %1049 = vsyncpa [#allocation6 + $0x1], 1 }
 0x366   :  { %1050 = vsyncpa [#allocation9], 1 }
 0x367   :  { %1051 = vsyncpa [#allocation4], 1 }
 0x368   :  { %1053 = vsyncpa [#allocation4 + $0x1], 1 }

</bundles_post_ra>
